<compile_context>
chip_gen: v7x
topology: tpu7x:2x2x1
jax: 0.10.0
libtpu: 0.0.40
codegen_flags: <defaults>
</compile_context>

<pallas_src>
import functools

import jax
import jax.numpy as jnp
from jax import lax
from jax.experimental import pallas as pl
from jax.experimental.pallas import tpu as pltpu


def _ce_kernel(x_ref, t_ref, o_ref, *, total_n, tile_n):
    i = pl.program_id(0)

    x = x_ref[...].astype(jnp.float32)            # (tile_n, C)
    t = t_ref[...]                                # (tile_n, 1) int32

    # stable log-sum-exp over classes (lane axis)
    m = jnp.max(x, axis=-1, keepdims=True)        # (tile_n, 1)
    lse = jnp.log(jnp.sum(jnp.exp(x - m), axis=-1, keepdims=True)) + m

    # gather logit at target class via one-hot compare against lane iota
    classes = lax.broadcasted_iota(jnp.int32, x.shape, 1)   # (tile_n, C)
    x_t = jnp.sum(jnp.where(classes == t, x, 0.0), axis=-1, keepdims=True)

    nll = lse - x_t                               # (tile_n, 1)

    # mask rows of a (possibly partial) tail tile
    row = i * tile_n + lax.broadcasted_iota(jnp.int32, nll.shape, 0)
    nll = jnp.where(row < total_n, nll, 0.0)

    # lane-dense per-tile partial sum; full reduce + /N happens outside
    o_ref[...] = jnp.full(o_ref.shape, jnp.sum(nll), dtype=jnp.float32)


def _pick_tile_n(N, C, itemsize, vmem_budget_bytes):
    # Double-buffered logits tile dominates VMEM: 2 * tile_n * C * itemsize.
    max_rows = max(8, vmem_budget_bytes // (2 * max(C, 1) * itemsize))
    n_pad = ((N + 7) // 8) * 8
    tile = min(1024, int(max_rows), n_pad)
    tile = max(8, (tile // 8) * 8)
    return tile


def cross_entropy_loss(x, target, *, tile_n=None,
                       vmem_budget_bytes=16 * 1024 * 1024):
    """x: (N, C) float logits; target: (N,) int labels. Returns scalar mean CE."""
    N, C = x.shape
    if tile_n is None:
        tile_n = _pick_tile_n(N, C, jnp.dtype(x.dtype).itemsize, vmem_budget_bytes)
    num_tiles = pl.cdiv(N, tile_n)
    t2d = target.astype(jnp.int32).reshape(N, 1)

    kernel = functools.partial(_ce_kernel, total_n=N, tile_n=tile_n)

    partials = pl.pallas_call(
        kernel,
        out_shape=jax.ShapeDtypeStruct((num_tiles, 8, 128), jnp.float32),
        grid_spec=pltpu.PrefetchScalarGridSpec(
            num_scalar_prefetch=0,
            grid=(num_tiles,),
            in_specs=[
                pl.BlockSpec((tile_n, C), lambda i: (i, 0)),   # logits tile
                pl.BlockSpec((tile_n, 1), lambda i: (i, 0)),   # target tile
            ],
            out_specs=pl.BlockSpec((1, 8, 128), lambda i: (i, 0, 0)),
        ),
        compiler_params=pltpu.CompilerParams(
            dimension_semantics=("parallel",),      # independent per-tile partials
            vmem_limit_bytes=32 * 1024 * 1024,      # safe on v5e/v6e/v7x
        ),
    )(x, t2d)

    return jnp.sum(partials[:, 0, 0]) / jnp.float32(N)


def _reference(x, target):
    x = x.astype(jnp.float32)
    logp = jax.nn.log_softmax(x, axis=-1)
    nll = -jnp.take_along_axis(logp, target.astype(jnp.int32)[:, None], axis=-1)[:, 0]
    return jnp.mean(nll)


if __name__ == "__main__":
    key = jax.random.PRNGKey(0)
    k1, k2 = jax.random.split(key)

    N, C = 16, 32          # small shapes: batch=16, num_classes=32
    x = jax.random.normal(k1, (N, C), dtype=jnp.float32)
    target = jax.random.randint(k2, (N,), 0, C, dtype=jnp.int32)

    loss = cross_entropy_loss(x, target)
    jax.block_until_ready(loss)

    ref = _reference(x, target)
    assert jnp.allclose(loss, ref, atol=1e-5, rtol=1e-5), (loss, ref)

    print("KERNEL_OK")
</pallas_src>

<mosaic_0001>
module attributes {stable_mosaic.version = 11 : i64} {
  func.func @_ce_kernel(%arg0: i32, %arg1: memref<16x32xf32, #tpu.memory_space<vmem>>, %arg2: memref<16x1xi32, #tpu.memory_space<vmem>>, %arg3: memref<1x8x128xf32, #tpu.memory_space<vmem>>) attributes {dimension_semantics = [#tpu.dimension_semantics<parallel>], iteration_bounds = array<i64: 1>, scalar_prefetch = 0 : i64, scratch_operands = 0 : i64, tpu.core_type = #tpu.core_type<tc>, window_params = [{transform_indices = @transform_0, window_bounds = array<i64: 16, 32>}, {transform_indices = @transform_1, window_bounds = array<i64: 16, 1>}, {transform_indices = @transform_2, window_bounds = array<i64: 1, 8, 128>}]} {
    %c0 = arith.constant 0 : index
    %c0_0 = arith.constant 0 : index
    %0 = vector.load %arg1[%c0, %c0_0] : memref<16x32xf32, #tpu.memory_space<vmem>>, vector<16x32xf32>
    %c0_1 = arith.constant 0 : index
    %c0_2 = arith.constant 0 : index
    %1 = vector.load %arg2[%c0_1, %c0_2] : memref<16x1xi32, #tpu.memory_space<vmem>>, vector<16x1xi32>
    %cst = arith.constant dense<0xFF800000> : vector<16xf32>
    %2 = vector.multi_reduction <maximumf>, %0, %cst [1] : vector<16x32xf32> to vector<16xf32>
    %3 = vector.shape_cast %2 : vector<16xf32> to vector<16x1xf32>
    %4 = vector.broadcast %3 : vector<16x1xf32> to vector<16x32xf32>
    %5 = arith.subf %0, %4 : vector<16x32xf32>
    %6 = math.exp %5 : vector<16x32xf32>
    %cst_3 = arith.constant dense<0.000000e+00> : vector<16xf32>
    %7 = vector.multi_reduction <add>, %6, %cst_3 [1] : vector<16x32xf32> to vector<16xf32>
    %8 = vector.shape_cast %7 : vector<16xf32> to vector<16x1xf32>
    %9 = math.log %8 : vector<16x1xf32>
    %10 = arith.addf %9, %3 : vector<16x1xf32>
    %11 = tpu.iota {dimensions = array<i32: 1>} : vector<16x32xi32>
    %12 = vector.broadcast %1 : vector<16x1xi32> to vector<16x32xi32>
    %13 = arith.cmpi eq, %11, %12 : vector<16x32xi32>
    %cst_4 = arith.constant 0.000000e+00 : f32
    %14 = vector.broadcast %cst_4 : f32 to vector<16x32xf32>
    %15 = arith.select %13, %0, %14 : vector<16x32xi1>, vector<16x32xf32>
    %cst_5 = arith.constant dense<0.000000e+00> : vector<16xf32>
    %16 = vector.multi_reduction <add>, %15, %cst_5 [1] : vector<16x32xf32> to vector<16xf32>
    %17 = vector.shape_cast %16 : vector<16xf32> to vector<16x1xf32>
    %18 = arith.subf %10, %17 : vector<16x1xf32>
    %c16_i32 = arith.constant 16 : i32
    %19 = arith.muli %arg0, %c16_i32 : i32
    %20 = tpu.iota {dimensions = array<i32: 0>} : vector<16x1xi32>
    %21 = vector.broadcast %19 : i32 to vector<16x1xi32>
    %22 = arith.addi %21, %20 : vector<16x1xi32>
    %c16_i32_6 = arith.constant 16 : i32
    %23 = vector.broadcast %c16_i32_6 : i32 to vector<16x1xi32>
    %24 = arith.cmpi slt, %22, %23 : vector<16x1xi32>
    %cst_7 = arith.constant 0.000000e+00 : f32
    %25 = vector.broadcast %cst_7 : f32 to vector<16x1xf32>
    %26 = arith.select %24, %18, %25 : vector<16x1xi1>, vector<16x1xf32>
    %27 = vector.shape_cast %26 : vector<16x1xf32> to vector<1x16x1xf32>
    %cst_8 = arith.constant dense<0.000000e+00> : vector<1xf32>
    %28 = vector.multi_reduction <add>, %27, %cst_8 [1, 2] : vector<1x16x1xf32> to vector<1xf32>
    %29 = vector.shape_cast %28 : vector<1xf32> to vector<1x1x1xf32>
    %30 = vector.extract %29[0, 0, 0] : f32 from vector<1x1x1xf32>
    %31 = vector.broadcast %30 : f32 to vector<1x8x128xf32>
    %c0_9 = arith.constant 0 : index
    %c0_10 = arith.constant 0 : index
    %c0_11 = arith.constant 0 : index
    %32 = vector.load %arg3[%c0_9, %c0_10, %c0_11] : memref<1x8x128xf32, #tpu.memory_space<vmem>>, vector<1x8x128xf32>
    tpu.vector_store %arg3[%c0_9, %c0_10, %c0_11], %31 {strides = array<i32>} : memref<1x8x128xf32, #tpu.memory_space<vmem>>, vector<1x8x128xf32>,
    return
  }
  func.func @transform_0(%arg0: i32) -> (i32, i32) {
    %c0_i32 = arith.constant 0 : i32
    %c0_i32_0 = arith.constant 0 : i32
    return %arg0, %c0_i32 : i32, i32
  }
  func.func @transform_1(%arg0: i32) -> (i32, i32) {
    %c0_i32 = arith.constant 0 : i32
    %c0_i32_0 = arith.constant 0 : i32
    return %arg0, %c0_i32 : i32, i32
  }
  func.func @transform_2(%arg0: i32) -> (i32, i32, i32) {
    %c0_i32 = arith.constant 0 : i32
    %c0_i32_0 = arith.constant 0 : i32
    %c0_i32_1 = arith.constant 0 : i32
    return %arg0, %c0_i32, %c0_i32_0 : i32, i32, i32
  }
}

</mosaic_0001>

<bundles_post_ra>
// kernel: tpu_custom_call.1
= control target key start
LH: loop header
LB: loop body
LE: loop exit
PB: predicated region body
PF: predicated region fallthrough
CT: control target
= control target key end

     0   :  { %vm16_vm0 = vcmask 261120   ;;  %v139_v4 = vmov 0   ;;  %s186_s0 = inlined_call_operand.vmem [shape: f32[16,32], index: 0, kind: input, shape index: {}]   ;;  %s187_s1 = inlined_call_operand.vmem [shape: s32[16,1], index: 1, kind: input, shape index: {}]   ;;  %s188_s2 = inlined_call_operand.hbm [shape: f32[1,8,128], index: 2, kind: output, shape index: {}]  }
   0x1   :  { %v12_v0 = vld [vmem:[%s186_s0] sm:$0xff]  ;;  %v13_v1 = vld [vmem:[%s186_s0 + $0x8] sm:$0xff]  ;;  %105 = vset.pattern.permute.xlu1 %v139_v4  ;;  %106 = vset.pattern.permute.xlu0 %v139_v4 }
   0x2   :  { %v14_v2 = vld [vmem:[%s187_s1] sm:$0xff]  ;;  %v17_v3 = vsel %vm16_vm0, %v12_v0, -inf }
   0x3   :  { %7 = vsyncpa [#allocation3], 0  ;;  %18 = vmax.xlane.f32.xlu0 %v17_v3  ;;  %44 = vperm.xlu1 %105, %v14_v2   ;;  %v20_v5 = vsel %vm16_vm0, %v13_v1, -inf  ;;  %v15_v6 = vld [vmem:[%s187_s1 + $0x8] sm:$0xff]  ;;  %v41_v11 = vlaneseq  ;;  %vm72_vm3 = vcmask 7168   ;;  %s140_s0 = smov [#allocation2]  }
   0x4   :  { %s93_s1 = sshll.u32 %s140_s0, 4  ;;  %s94_s1 = int_to_ptr.vmem [resolvable:$true] %s93_s1 }
   0x5   :  { %v42_v15 = vand.u32 127, %v41_v11  ;;  %s115_s18 = scalar_lea.vmem %s94_s1, 128  ;;  %p120_p1 = scmp.lt.s32.totalorder %s94_s1, %s94_s1 }
   0x6   :  { %p116_p0 = scmp.ne.s32.totalorder %s94_s1, %s115_s18  ;;  %p121_p2 = scmp.lt.s32.totalorder %s115_s18, %s115_s18 }
   0x7   :  { %21 = vmax.xlane.f32.xlu0 %v20_v5  ;;  %47 = vperm.xlu1 %105, %v15_v6  }
   0x8   :  { %p122_p3 = por %p121_p2, %p120_p1 }
   0xa   :  { %p123_p4 = pnand %p122_p3, %p116_p0 }
  0x82   :  { %v45_v14 = vpop.permute.xlu1 %44 }
  0x83   :  { %vm49_vm1 = vcmp.eq.s32.totalorder %v42_v15, %v45_v14 }
  0x84   :  { %v51_v18 = vsel %vm49_vm1, %v12_v0, 0.0 }
  0x85   :  { %v53_v20 = vsel %vm16_vm0, %v51_v18, 0.0 }
  0x86   :  { %v48_v16 = vpop.permute.xlu1 %47 }
  0x87   :  { %vm50_vm2 = vcmp.eq.s32.totalorder %v42_v15, %v48_v16 }
  0x88   :  { %v52_v22 = vsel %vm50_vm2, %v13_v1, 0.0 }
  0x89   :  { %v56_v24 = vsel %vm16_vm0, %v52_v22, 0.0 }
  0x90   :  { %v19_v7 = vpop.xlane.xlu0 %18 }
  0x91   :  { %v23_v8 = vsub.f32 %v12_v0, %v19_v7 }
  0x93   :  { %v25_v9 = vmul.f32 1.442695, %v23_v8 }
  0x94   :  { %v22_v10 = vpop.xlane.xlu0 %21 }
  0x95   :  { %107 = vpow2.f32 %v25_v9  ;;  %v24_v12 = vsub.f32 %v13_v1, %v22_v10 }
  0x97   :  { %v27_v13 = vmul.f32 1.442695, %v24_v12 }
  0x99   :  { %109 = vpow2.f32 %v27_v13 }
  0x9f   :  { %v108_v17 = vpop.eup %107 }
  0xa0   :  { %v29_v19 = vsel %vm16_vm0, %v108_v17, 0.0 }
  0xa1   :  { %30 = vadd.xlane.f32.xlu0 %v29_v19 }
  0xa3   :  { %v110_v21 = vpop.eup %109 }
  0xa4   :  { %v32_v23 = vsel %vm16_vm0, %v110_v21, 0.0 }
  0xa5   :  { %33 = vadd.xlane.f32.xlu1 %v32_v23  ;;  %54 = vadd.xlane.f32.xlu0 %v53_v20 }
  0xa9   :  { %57 = vadd.xlane.f32.xlu0 %v56_v24 }
 0x12e   :  { %v31_v25 = vpop.xlane.xlu0 %30 }
 0x12f   :  { %111 = vlog2.f32 %v31_v25 }
 0x132   :  { %v34_v26 = vpop.xlane.xlu1 %33  ;;  %v55_v29 = vpop.xlane.xlu0 %54 }
 0x133   :  { %113 = vlog2.f32 %v34_v26 }
 0x136   :  { %v58_v35 = vpop.xlane.xlu0 %57 }
 0x139   :  { %v112_v27 = vpop.eup %111 }
 0x13a   :  { %v36_v28 = vmul.f32 0.6931472, %v112_v27 }
 0x13c   :  { %v39_v30 = vadd.f32 %v36_v28, %v19_v7 }
 0x13d   :  { %v114_v31 = vpop.eup %113 }
 0x13e   :  { %v38_v32 = vmul.f32 0.6931472, %v114_v31  ;;  %v59_v33 = vsub.f32 %v39_v30, %v55_v29 }
 0x140   :  { %v40_v34 = vadd.f32 %v38_v32, %v22_v10  ;;  %v73_v37 = vsel %vm72_vm3, %v59_v33, 0.0 }
 0x142   :  { %v60_v36 = vsub.f32 %v40_v34, %v58_v35 }
 0x144   :  { %v74_v38 = vsel %vm72_vm3, %v60_v36, 0.0 }
 0x145   :  { %v75_v39 = vadd.f32 %v74_v38, %v73_v37 }
 0x147   :  { %76 = vadd.xlane.f32.xlu0 %v75_v39 }
 0x1d4   :  { %v77_v40 = vpop.xlane.xlu0 %76 }
 0x1d5   :  { %v78_v41 = vrot.slane %v77_v40, 4 }
 0x1d7   :  { %v79_v42 = vadd.f32 %v78_v41, %v77_v40 }
 0x1d9   :  { %v80_v43 = vrot.slane %v79_v42, 2 }
 0x1db   :  { %v81_v44 = vadd.f32 %v80_v43, %v79_v42 }
 0x1dd   :  { %v82_v45 = vrot.slane %v81_v44, 1 }
 0x1df   :  { %v83_v46 = vadd.f32 %v82_v45, %v81_v44 }
 0x1e1   :  { %101 = vpush %v83_v46 }
 0x212   :  { %s102_s17 = spop %101 }
 0x213   :  { %v85_v47 = vstv %s102_s17 }
 0x214   :  { %86 = vst [vmem:[#allocation2] sm:$0xff] %v85_v47 }
 0x215   :  { %126 = shalt.err (!%p123_p4)
}
 0x216   :  { %s127_s21 = scalar_lea.hbm %s188_s2, 128 }
 0x217   :  { %p128_p5 = scmp.ne.s32.totalorder %s188_s2, %s127_s21  ;;  %p131_p6 = scmp.lt.u32.totalorder %s127_s21, %s188_s2 }
 0x219   :  { %p133_p7 = pnand %p131_p6, %p128_p5 }
 0x21b   :  { %136 = shalt.err (!%p133_p7)
}
 0x21c   :  { %96 = dma.vmem_to_hbm [thread:$0]  %s94_s1, 128, %s188_s2, [#allocation3]  }
 0x21d   :  { %137 = dma.done.wait [#allocation3], 128  }
 0x21e   :  { %138 = vsyncadd [#allocation3], 4294967168 }
 0x21f   :  { %100 = vsyncpa [#allocation3], 1 }

</bundles_post_ra>
